<compile_context>
chip_gen: v7x
topology: tpu7x:2x2x1
jax: 0.10.0
libtpu: 0.0.40
codegen_flags: <defaults>
</compile_context>

<pallas_src>
import functools

import numpy as np
import jax
import jax.numpy as jnp
from jax.experimental import pallas as pl
from jax.experimental.pallas import tpu as pltpu


def _round_up(x, m):
    return (x + m - 1) // m * m


def _pad2d(x, rows, cols):
    return jnp.pad(x, ((0, rows - x.shape[0]), (0, cols - x.shape[1])))


def _auto_vmem_limit():
    """Generation-aware VMEM budget: <=56 MiB on v7x, ~112 MiB on v5e/v6e."""
    cap = 128 * 1024 * 1024
    try:
        cap = pltpu.get_tpu_info().vmem_capacity_bytes
    except Exception:
        pass
    return int(min(cap - 8 * 1024 * 1024, 112 * 1024 * 1024))


# ---------------------------------------------------------------------------
# K/V projection: runs ONCE (not per query tile).  Wk and Wv (and biases) are
# fused into a single [dn_p, 2*di_p] operand so the MXU does one pass.
# ---------------------------------------------------------------------------
def _kv_projection_kernel(node_ref, wkv_ref, bkv_ref, k_ref, v_ref, *, di_p):
    kv = jax.lax.dot_general(
        node_ref[...], wkv_ref[...], (((1,), (0,)), ((), ())),
        preferred_element_type=jnp.float32) + bkv_ref[...]
    k_ref[...] = kv[:, :di_p].astype(k_ref.dtype)
    v_ref[...] = kv[:, di_p:].astype(v_ref.dtype)


# ---------------------------------------------------------------------------
# Attention kernel: one query-row tile per grid step; Wq/bq/K/V/mask resident.
# ---------------------------------------------------------------------------
def _linear_attention_kernel(fut_ref, wq_ref, bq_ref, k_ref, v_ref, mask_ref,
                             o_ref, *, mxu_dtype, approx_recip):
    dn = (((1,), (0,)), ((), ()))              # contract a[:, k] with b[k, :]

    # Q projection (tau pre-folded into wq/bq): bf16/f32 operands, f32 acc,
    # f32 bias add.
    q = jax.lax.dot_general(fut_ref[...], wq_ref[...], dn,
                            preferred_element_type=jnp.float32) + bq_ref[...]

    # score = Q @ K^T without materializing a K transpose: contract the
    # feature (last) axis of both operands on the MXU.  The additive mask is
    # 0 for real keys and -1e30 for padded key columns.
    s = jax.lax.dot_general(q.astype(mxu_dtype), k_ref[...],
                            (((1,), (1,)), ((), ())),
                            preferred_element_type=jnp.float32) + mask_ref[...]

    # Numerically stable softmax over the key axis (f32 throughout); the
    # normalization reciprocal goes to the otherwise-idle EUP slot.
    m = jnp.max(s, axis=1, keepdims=True)
    e = jnp.exp(s - m)
    denom = jnp.sum(e, axis=1, keepdims=True)
    w = e * pl.reciprocal(denom, approx=approx_recip)

    # z = weight @ V (bf16/f32 operands, f32 accumulation).
    o_ref[...] = jax.lax.dot_general(
        w.astype(mxu_dtype), v_ref[...], dn,
        preferred_element_type=jnp.float32).astype(o_ref.dtype)


def linear_attention(node_emb, future, params, tau=0.5, *,
                     mxu_dtype=jnp.bfloat16, approx_recip=True,
                     block_m=256, out_dtype=jnp.float32,
                     vmem_limit_bytes=None):
    """Glue (padding, casts, specs) in plain JAX; hot-path compute in Pallas."""
    wq_t, bq = params["wq_t"], params["bq"]    # [future_dim, in_dim], [1, in_dim]
    wk_t, bk = params["wk_t"], params["bk"]    # [node_dim,   in_dim], [1, in_dim]
    wv_t, bv = params["wv_t"], params["bv"]

    n, node_dim = node_emb.shape
    m, future_dim = future.shape
    in_dim = wq_t.shape[1]

    if vmem_limit_bytes is None:
        vmem_limit_bytes = _auto_vmem_limit()

    # Lane/sublane-friendly padded sizes.
    np_ = _round_up(n, 128)                    # key axis = lane dim of the score
    dn_p = _round_up(node_dim, 128)
    df_p = _round_up(future_dim, 128)
    di_p = _round_up(in_dim, 128)

    # Query-tile rows: multiple of 16 (bf16 sublane packing); pick a size that
    # gives >= 2 grid steps whenever M permits so both v7x TensorCores work.
    tm = min(block_m, max(_round_up(m, 16) // 2, 16))
    tm = _round_up(tm, 16)
    mp = _round_up(m, tm)

    # Pad with zeros; cast MXU operands to the compute dtype.  Biases stay f32
    # (added to the f32 accumulators inside the kernels).  tau is folded into
    # the Q projection so the [TM, Np] score is never rescaled.
    node_p = _pad2d(node_emb, np_, dn_p).astype(mxu_dtype)
    fut_p = _pad2d(future, mp, df_p).astype(mxu_dtype)
    wq_p = _pad2d(wq_t * tau, df_p, di_p).astype(mxu_dtype)
    bq_p = _pad2d(bq * tau, 1, di_p).astype(jnp.float32)
    wkv_p = jnp.concatenate(
        [_pad2d(wk_t, dn_p, di_p), _pad2d(wv_t, dn_p, di_p)], axis=1
    ).astype(mxu_dtype)
    bkv_p = jnp.concatenate(
        [_pad2d(bk, 1, di_p), _pad2d(bv, 1, di_p)], axis=1
    ).astype(jnp.float32)

    # Additive key mask: 0 for real keys, -1e30 for padded key columns.
    mask = jnp.where(jnp.arange(np_, dtype=jnp.int32)[None, :] < n,
                     0.0, -1e30).astype(jnp.float32)

    # --- K/V projection: single invocation, whole arrays in VMEM. ---
    k_p, v_p = pl.pallas_call(
        functools.partial(_kv_projection_kernel, di_p=di_p),
        out_shape=(jax.ShapeDtypeStruct((np_, di_p), mxu_dtype),
                   jax.ShapeDtypeStruct((np_, di_p), mxu_dtype)),
        compiler_params=pltpu.CompilerParams(
            vmem_limit_bytes=vmem_limit_bytes),
    )(node_p, wkv_p, bkv_p)

    # --- Attention: 1-D grid over query-row tiles. ---
    def resident(shape):
        # Invariant across the grid -> single buffer (no wasted double buffer).
        return pl.BlockSpec(shape, lambda i: (0, 0),
                            pipeline_mode=pl.Buffered(1))

    itemsize = lambda dt: np.dtype(dt).itemsize
    cost = pl.CostEstimate(
        flops=2 * mp * df_p * di_p + 4 * mp * np_ * di_p,
        transcendentals=mp * np_,
        bytes_accessed=(mp * df_p * itemsize(mxu_dtype)          # future
                        + df_p * di_p * itemsize(mxu_dtype)      # Wq
                        + di_p * 4 + np_ * 4                     # bq, mask
                        + 2 * np_ * di_p * itemsize(mxu_dtype)   # K, V
                        + mp * di_p * itemsize(out_dtype)))      # output

    out = pl.pallas_call(
        functools.partial(_linear_attention_kernel,
                          mxu_dtype=mxu_dtype, approx_recip=approx_recip),
        out_shape=jax.ShapeDtypeStruct((mp, di_p), out_dtype),
        grid=(mp // tm,),
        in_specs=[
            pl.BlockSpec((tm, df_p), lambda i: (i, 0)),   # future tile (queries)
            resident((df_p, di_p)),                       # Wq^T (tau folded)
            resident((1, di_p)),                          # bq   (tau folded)
            resident((np_, di_p)),                        # K
            resident((np_, di_p)),                        # V
            resident((1, np_)),                           # additive key mask
        ],
        out_specs=pl.BlockSpec((tm, di_p), lambda i: (i, 0)),
        compiler_params=pltpu.CompilerParams(
            dimension_semantics=("parallel",),            # shard M tiles across TCs
            vmem_limit_bytes=vmem_limit_bytes),
        cost_estimate=cost,
    )(fut_p, wq_p, bq_p, k_p, v_p, mask)

    return out[:m, :in_dim]


def init_params(key, node_dim, future_dim, in_dim):
    """nn.Linear-style init (kaiming-uniform-ish).  Weights are stored already
    transposed to [in_features, out_features] and biases as [1, out] so the
    per-call wrapper does no transposes/reshapes."""
    ks = jax.random.split(key, 6)

    def linear_init(kw, kb, fan_in, fan_out):
        bound = 1.0 / jnp.sqrt(jnp.asarray(fan_in, jnp.float32))
        w_t = jax.random.uniform(kw, (fan_in, fan_out), jnp.float32, -bound, bound)
        b = jax.random.uniform(kb, (1, fan_out), jnp.float32, -bound, bound)
        return w_t, b

    wq_t, bq = linear_init(ks[0], ks[1], future_dim, in_dim)
    wk_t, bk = linear_init(ks[2], ks[3], node_dim, in_dim)
    wv_t, bv = linear_init(ks[4], ks[5], node_dim, in_dim)
    return dict(wq_t=wq_t, bq=bq, wk_t=wk_t, bk=bk, wv_t=wv_t, bv=bv)


def _reference(node_emb, future, p, tau=0.5):
    """Pure-JAX reference of the PyTorch forward for verification."""
    q = future @ p["wq_t"] + p["bq"]
    k = node_emb @ p["wk_t"] + p["bk"]
    v = node_emb @ p["wv_t"] + p["bv"]
    s = q @ k.T
    w = jax.nn.softmax(s * tau, axis=1)
    return w @ v


if __name__ == "__main__":
    key = jax.random.PRNGKey(0)
    k_node, k_fut, k_param, k_fut2 = jax.random.split(key, 4)

    # Small shapes consistent with the module's forward.
    N, M = 16, 8                       # number of nodes, number of query rows
    node_dim, future_dim, in_dim = 32, 16, 32

    node_emb = jax.random.normal(k_node, (N, node_dim), jnp.float32)
    future = jax.random.normal(k_fut, (M, future_dim), jnp.float32)
    params = init_params(k_param, node_dim, future_dim, in_dim)

    z_ref = _reference(node_emb, future, params, tau=0.5)

    # Near-exact path (f32 MXU operands, exact reciprocal) for verification.
    z_f32 = jax.block_until_ready(
        linear_attention(node_emb, future, params, tau=0.5,
                         mxu_dtype=jnp.float32, approx_recip=False))
    assert z_f32.shape == (M, in_dim)
    assert jnp.allclose(z_f32, z_ref, atol=1e-4, rtol=1e-4), "f32 mismatch vs reference"

    # Default perf path: bf16 MXU operands + EUP approx reciprocal.
    z = jax.block_until_ready(linear_attention(node_emb, future, params, tau=0.5))
    assert z.shape == (M, in_dim)
    assert jnp.allclose(z, z_ref, atol=5e-2, rtol=5e-2), "bf16 mismatch vs reference"

    # Multi-tile path (grid >= 2, padded query rows) — exact path check.
    M2 = 40
    future2 = jax.random.normal(k_fut2, (M2, future_dim), jnp.float32)
    z2_ref = _reference(node_emb, future2, params, tau=0.5)
    z2 = jax.block_until_ready(
        linear_attention(node_emb, future2, params, tau=0.5,
                         mxu_dtype=jnp.float32, approx_recip=False))
    assert z2.shape == (M2, in_dim)
    assert jnp.allclose(z2, z2_ref, atol=1e-4, rtol=1e-4), "multi-tile mismatch"

    print("KERNEL_OK")
</pallas_src>

<mosaic_0001>
module attributes {stable_mosaic.version = 11 : i64} {
  func.func @_kv_projection_kernel(%arg0: memref<128x128xf32, #tpu.memory_space<vmem>>, %arg1: memref<128x256xf32, #tpu.memory_space<vmem>>, %arg2: memref<1x256xf32, #tpu.memory_space<vmem>>, %arg3: memref<128x128xf32, #tpu.memory_space<vmem>>, %arg4: memref<128x128xf32, #tpu.memory_space<vmem>>) attributes {dimension_semantics = [], scalar_prefetch = 0 : i64, scratch_operands = 0 : i64, tpu.core_type = #tpu.core_type<tc>} {
    %c0 = arith.constant 0 : index
    %c0_0 = arith.constant 0 : index
    %0 = vector.load %arg0[%c0, %c0_0] : memref<128x128xf32, #tpu.memory_space<vmem>>, vector<128x128xf32>
    %c0_1 = arith.constant 0 : index
    %c0_2 = arith.constant 0 : index
    %1 = vector.load %arg1[%c0_1, %c0_2] : memref<128x256xf32, #tpu.memory_space<vmem>>, vector<128x256xf32>
    %cst = arith.constant dense<0.000000e+00> : vector<128x256xf32>
    %2 = tpu.matmul %0, %1, %cst {dimension_numbers = #tpu.dot_dimension_numbers<[1], [0], [0], [1], [0, 0, 1, 1], [], []>} : vector<128x128xf32>, vector<128x256xf32>, vector<128x256xf32> -> vector<128x256xf32>
    %c0_3 = arith.constant 0 : index
    %c0_4 = arith.constant 0 : index
    %3 = vector.load %arg2[%c0_3, %c0_4] : memref<1x256xf32, #tpu.memory_space<vmem>>, vector<1x256xf32>
    %4 = vector.broadcast %3 : vector<1x256xf32> to vector<128x256xf32>
    %5 = arith.addf %2, %4 : vector<128x256xf32>
    %6 = vector.extract_strided_slice %5 {offsets = [0, 0], sizes = [128, 128], strides = [1, 1]} : vector<128x256xf32> to vector<128x128xf32>
    %c0_5 = arith.constant 0 : index
    %c0_6 = arith.constant 0 : index
    %7 = vector.load %arg3[%c0_5, %c0_6] : memref<128x128xf32, #tpu.memory_space<vmem>>, vector<128x128xf32>
    tpu.vector_store %arg3[%c0_5, %c0_6], %6 {strides = array<i32>} : memref<128x128xf32, #tpu.memory_space<vmem>>, vector<128x128xf32>,
    %8 = vector.extract_strided_slice %5 {offsets = [0, 128], sizes = [128, 128], strides = [1, 1]} : vector<128x256xf32> to vector<128x128xf32>
    %c0_7 = arith.constant 0 : index
    %c0_8 = arith.constant 0 : index
    %9 = vector.load %arg4[%c0_7, %c0_8] : memref<128x128xf32, #tpu.memory_space<vmem>>, vector<128x128xf32>
    tpu.vector_store %arg4[%c0_7, %c0_8], %8 {strides = array<i32>} : memref<128x128xf32, #tpu.memory_space<vmem>>, vector<128x128xf32>,
    return
  }
}

</mosaic_0001>

<bundles_post_ra>
// kernel: tpu_custom_call.1
= control target key start
LH: loop header
LB: loop body
LE: loop exit
PB: predicated region body
PF: predicated region fallthrough
CT: control target
= control target key end

     0   :  { %10 = vsyncpa [#allocation3], 0  ;;  %s683_s0 = inlined_call_operand.hbm [shape: f32[128,128], index: 0, kind: input, shape index: {}]   ;;  %s684_s1 = inlined_call_operand.hbm [shape: f32[128,256], index: 1, kind: input, shape index: {}]   ;;  %s685_s2 = inlined_call_operand.hbm [shape: f32[1,256], index: 2, kind: input, shape index: {}]   ;;  %s686_s3 = inlined_call_operand.hbm [shape: f32[128,128], index: 3, kind: output, shape index: {0}]   ;;  %s687_s4 = inlined_call_operand.hbm [shape: f32[128,128], index: 4, kind: output, shape index: {1}]  }
   0x1   :  { %11 = vsyncpa [#allocation6], 0 }
   0x2   :  { %12 = vsyncpa [#allocation4], 0 }
   0x3   :  { %13 = vsyncpa [#allocation10], 0  ;;  %s520_s15 = smov [#allocation5]   ;;  %s402_s19 = scalar_lea.hbm %s684_s1, 4096 }
   0x4   :  { %s31_s16 = sshll.u32 %s520_s15, 4  ;;  %p403_p0 = scmp.ne.s32.totalorder %s684_s1, %s402_s19  ;;  %s32_s16 = int_to_ptr.vmem [resolvable:$true] %s31_s16 }
   0x5   :  { %p406_p1 = scmp.lt.u32.totalorder %s402_s19, %s684_s1 }
   0x7   :  { %p408_p2 = pnand %p406_p1, %p403_p0 }
   0x9   :  { %411 = shalt.err (!%p408_p2)
}
   0xa   :  { %s412_s24 = scalar_lea.vmem %s32_s16, 4096  ;;  %p417_p4 = scmp.lt.s32.totalorder %s32_s16, %s32_s16 }
   0xb   :  { %p413_p3 = scmp.ne.s32.totalorder %s32_s16, %s412_s24  ;;  %p418_p5 = scmp.lt.s32.totalorder %s412_s24, %s412_s24 }
   0xd   :  { %p419_p6 = por %p418_p5, %p417_p4 }
   0xf   :  { %p420_p7 = pnand %p419_p6, %p413_p3 }
  0x11   :  { %423 = shalt.err (!%p420_p7)
}
  0x12   :  { %s521_s25 = smov 256   ;;  %s522_s26 = smov 16  }
  0x13   :  { %37 = dma.hbm_to_vmem [thread:$0]  %s684_s1, 4096, %s32_s16, [#allocation6], %s521_s25, %s521_s25, %s522_s26  }
  0x14   :  { %s523_s29 = smov [#allocation2]   ;;  %s424_s7 = scalar_lea.hbm %s683_s0, 2048 }
  0x15   :  { %s19_s30 = sshll.u32 %s523_s29, 4  ;;  %p425_p8 = scmp.ne.s32.totalorder %s683_s0, %s424_s7  ;;  %s20_s30 = int_to_ptr.vmem [resolvable:$true] %s19_s30 }
  0x16   :  { %p428_p9 = scmp.lt.u32.totalorder %s424_s7, %s683_s0 }
  0x18   :  { %p430_p10 = pnand %p428_p9, %p425_p8 }
  0x1a   :  { %433 = shalt.err (!%p430_p10)
}
  0x1b   :  { %s434_s12 = scalar_lea.vmem %s20_s30, 2048  ;;  %p439_p12 = scmp.lt.s32.totalorder %s20_s30, %s20_s30 }
  0x1c   :  { %p435_p11 = scmp.ne.s32.totalorder %s20_s30, %s434_s12  ;;  %p440_p13 = scmp.lt.s32.totalorder %s434_s12, %s434_s12 }
  0x1e   :  { %p441_p0 = por %p440_p13, %p439_p12 }
  0x20   :  { %p442_p1 = pnand %p441_p0, %p435_p11 }
  0x22   :  { %445 = shalt.err (!%p442_p1)
}
  0x23   :  { %s524_s1 = smov 128   ;;  %s525_s13 = smov 8  }
  0x24   :  { %25 = dma.hbm_to_vmem [thread:$0]  %s683_s0, 2048, %s20_s30, [#allocation3], %s524_s1, %s524_s1, %s525_s13  }
  0x25   :  { %s526_s16 = smov [#allocation7]   ;;  %s446_s20 = scalar_lea.hbm %s685_s2, 32 }
  0x26   :  { %s44_s17 = sshll.u32 %s526_s16, 4  ;;  %p447_p2 = scmp.ne.s32.totalorder %s685_s2, %s446_s20  ;;  %s45_s17 = int_to_ptr.vmem [resolvable:$true] %s44_s17 }
  0x27   :  { %p450_p3 = scmp.lt.u32.totalorder %s446_s20, %s685_s2 }
  0x29   :  { %p452_p4 = pnand %p450_p3, %p447_p2 }
  0x2b   :  { %455 = shalt.err (!%p452_p4)
}
  0x2c   :  { %s456_s25 = scalar_lea.vmem %s45_s17, 32  ;;  %p461_p6 = scmp.lt.s32.totalorder %s45_s17, %s45_s17 }
  0x2d   :  { %p457_p5 = scmp.ne.s32.totalorder %s45_s17, %s456_s25  ;;  %p462_p7 = scmp.lt.s32.totalorder %s456_s25, %s456_s25 }
  0x2f   :  { %p463_p8 = por %p462_p7, %p461_p6 }
  0x31   :  { %p464_p9 = pnand %p463_p8, %p457_p5 }
  0x33   :  { %467 = shalt.err (!%p464_p9)
}
  0x34   :  { %47 = dma.hbm_to_vmem [thread:$0]  %s685_s2, 32, %s45_s17, [#allocation6]  }
  0x35   :  { %512 = dma.done.wait [#allocation3], 2048  }
  0x36   :  { %513 = vsyncadd [#allocation3], 4294965248 }
  0x37   :  { %514 = dma.done.wait [#allocation6], 4128  }
  0x38   :  { %515 = vsyncadd [#allocation6], 4294963168  ;;  %v527_v0 = vmov 0.0   ;;  %v74_v1 = vld [vmem:[#allocation5 + $0x8] sm:$0xff]  ;;  %v76_v2 = vld [vmem:[#allocation5 + $0x18] sm:$0xff]  ;;  %s528_s2 = smov [#allocation8]  }
  0x39   :  { %181 = vmatprep.mubr.f32.mxu0 %v527_v0  ;;  %229 = vmatprep.mubr.f32.mxu1 %v527_v0  ;;  %v73_v3 = vld [vmem:[#allocation5] sm:$0xff]  ;;  %v344_v4 = vpack.c.bf16 %v76_v2, %v74_v1  ;;  %v75_v5 = vld [vmem:[#allocation5 + $0x10] sm:$0xff]  ;;  %v78_v6 = vld [vmem:[#allocation5 + $0x28] sm:$0xff]  ;;  %v107_v2 = vlaneseq  ;;  %s315_s27 = sshll.u32 %s528_s2, 4  ;;  %s529_s28 = smov [#allocation9]   ;;  %s316_s27 = int_to_ptr.vmem [resolvable:$true] %s315_s27 }
  0x3a   :  { %v80_v7 = vld [vmem:[#allocation5 + $0x38] sm:$0xff]  ;;  %v346_v8 = vpack.c.bf16 %v75_v5, %v73_v3  ;;  %v77_v10 = vld [vmem:[#allocation5 + $0x20] sm:$0xff]  ;;  %v79_v11 = vld [vmem:[#allocation5 + $0x30] sm:$0xff]  ;;  %s327_s29 = sshll.u32 %s529_s28, 4  ;;  %s468_s30 = scalar_lea.vmem %s316_s27, 2048  ;;  %s646_s29 = int_to_ptr.vmem [resolvable:$true] %s327_s29 }
  0x3b   :  { %v348_v9 = vpack.c.bf16 %v80_v7, %v78_v6  ;;  %v82_v12 = vld [vmem:[#allocation5 + $0x48] sm:$0xff]  ;;  %345 = vmatprep.subr.bf16.mxu0 %v344_v4  ;;  %376 = vmatprep.subr.bf16.mxu1 %v344_v4  ;;  %v84_v13 = vld [vmem:[#allocation5 + $0x58] sm:$0xff]  ;;  %v350_v14 = vpack.c.bf16 %v79_v11, %v77_v10  ;;  %v81_v16 = vld [vmem:[#allocation5 + $0x40] sm:$0xff]  ;;  %v108_v3 = vshrl.u32 %v107_v2, 7  ;;  %p469_p10 = scmp.ne.s32.totalorder %s316_s27, %s468_s30  ;;  %p473_p11 = scmp.lt.s32.totalorder %s316_s27, %s316_s27 }
  0x3c   :  { %347 = vmatpush1.bf16.msra.mxu0 %v346_v8  ;;  %384 = vmatpush1.bf16.msra.mxu1 %v346_v8  ;;  %v352_v15 = vpack.c.bf16 %v84_v13, %v82_v12  ;;  %v83_v17 = vld [vmem:[#allocation5 + $0x50] sm:$0xff]  ;;  %v86_v18 = vld [vmem:[#allocation5 + $0x68] sm:$0xff]  ;;  %v88_v19 = vld [vmem:[#allocation5 + $0x78] sm:$0xff]  ;;  %p474_p12 = scmp.lt.s32.totalorder %s468_s30, %s468_s30 }
  0x3d   :  { %349 = vmatprep.subr.bf16.mxu0 %v348_v9  ;;  %377 = vmatprep.subr.bf16.mxu1 %v348_v9  ;;  %v354_v20 = vpack.c.bf16 %v83_v17, %v81_v16  ;;  %v356_v21 = vpack.c.bf16 %v88_v19, %v86_v18  ;;  %v85_v22 = vld [vmem:[#allocation5 + $0x60] sm:$0xff]  ;;  %v87_v23 = vld [vmem:[#allocation5 + $0x70] sm:$0xff]  ;;  %v90_v24 = vld [vmem:[#allocation5 + $0x88] sm:$0xff]  ;;  %v109_v4 = vsub.s32 0, %v108_v3  ;;  %v113_v6 = vsub.s32 1, %v108_v3 }
  0x3e   :  { %v92_v25 = vld [vmem:[#allocation5 + $0x98] sm:$0xff]  ;;  %v358_v26 = vpack.c.bf16 %v87_v23, %v85_v22  ;;  %v89_v28 = vld [vmem:[#allocation5 + $0x80] sm:$0xff]  ;;  %v91_v29 = vld [vmem:[#allocation5 + $0x90] sm:$0xff]  ;;  %p475_p13 = por %p474_p12, %p473_p11 }
  0x3f   :  { %v360_v27 = vpack.c.bf16 %v92_v25, %v90_v24  ;;  %v94_v30 = vld [vmem:[#allocation5 + $0xa8] sm:$0xff]  ;;  %v96_v31 = vld [vmem:[#allocation5 + $0xb8] sm:$0xff]  ;;  %v362_v32 = vpack.c.bf16 %v91_v29, %v89_v28  ;;  %v93_v34 = vld [vmem:[#allocation5 + $0xa0] sm:$0xff] }
  0x40   :  { %351 = vmatpush1.bf16.msra.mxu0 %v350_v14  ;;  %385 = vmatpush1.bf16.msra.mxu1 %v350_v14  ;;  %v364_v33 = vpack.c.bf16 %v96_v31, %v94_v30  ;;  %v95_v35 = vld [vmem:[#allocation5 + $0xb0] sm:$0xff]  ;;  %v98_v36 = vld [vmem:[#allocation5 + $0xc8] sm:$0xff]  ;;  %v100_v37 = vld [vmem:[#allocation5 + $0xd8] sm:$0xff]  ;;  %p476_p0 = pnand %p475_p13, %p469_p10 }
  0x41   :  { %353 = vmatprep.subr.bf16.mxu0 %v352_v15  ;;  %378 = vmatprep.subr.bf16.mxu1 %v352_v15  ;;  %v366_v38 = vpack.c.bf16 %v95_v35, %v93_v34  ;;  %v368_v39 = vpack.c.bf16 %v100_v37, %v98_v36  ;;  %v97_v40 = vld [vmem:[#allocation5 + $0xc0] sm:$0xff]  ;;  %v99_v41 = vld [vmem:[#allocation5 + $0xd0] sm:$0xff]  ;;  %v102_v42 = vld [vmem:[#allocation5 + $0xe8] sm:$0xff] }
  0x42   :  { %v104_v43 = vld [vmem:[#allocation5 + $0xf8] sm:$0xff]  ;;  %v370_v44 = vpack.c.bf16 %v99_v41, %v97_v40  ;;  %v101_v46 = vld [vmem:[#allocation5 + $0xe0] sm:$0xff]  ;;  %v103_v47 = vld [vmem:[#allocation5 + $0xf0] sm:$0xff] }
  0x43   :  { %v372_v45 = vpack.c.bf16 %v104_v43, %v102_v42  ;;  %v374_v48 = vpack.c.bf16 %v103_v47, %v101_v46  ;;  %v57_v49 = vld [vmem:[#allocation2] sm:$0xff]  ;;  %v58_v51 = vld [vmem:[#allocation2 + $0x8] sm:$0xff]  ;;  %v59_v53 = vld [vmem:[#allocation2 + $0x10] sm:$0xff] }
  0x44   :  { %355 = vmatpush1.bf16.msra.mxu0 %v354_v20  ;;  %386 = vmatpush1.bf16.msra.mxu1 %v354_v20  ;;  %v65_v50 = vld [vmem:[#allocation2 + $0x40] sm:$0xff]  ;;  %v66_v52 = vld [vmem:[#allocation2 + $0x48] sm:$0xff]  ;;  %v67_v54 = vld [vmem:[#allocation2 + $0x50] sm:$0xff] }
  0x45   :  { %357 = vmatprep.subr.bf16.mxu0 %v356_v21  ;;  %379 = vmatprep.subr.bf16.mxu1 %v356_v21  ;;  %v60_v55 = vld [vmem:[#allocation2 + $0x18] sm:$0xff]  ;;  %v61_v57 = vld [vmem:[#allocation2 + $0x20] sm:$0xff]  ;;  %v62_v59 = vld [vmem:[#allocation2 + $0x28] sm:$0xff] }
  0x46   :  { %v68_v56 = vld [vmem:[#allocation2 + $0x58] sm:$0xff]  ;;  %v69_v58 = vld [vmem:[#allocation2 + $0x60] sm:$0xff]  ;;  %v70_v60 = vld [vmem:[#allocation2 + $0x68] sm:$0xff] }
  0x47   :  { %v63_v61 = vld [vmem:[#allocation2 + $0x30] sm:$0xff]  ;;  %v64_v63 = vld [vmem:[#allocation2 + $0x38] sm:$0xff]  ;;  %v105_v5 = vld [vmem:[#allocation7] sm:$0x3] }
  0x48   :  { %359 = vmatpush1.bf16.msra.mxu0 %v358_v26  ;;  %387 = vmatpush1.bf16.msra.mxu1 %v358_v26  ;;  %v71_v62 = vld [vmem:[#allocation2 + $0x70] sm:$0xff]  ;;  %v72_v1 = vld [vmem:[#allocation2 + $0x78] sm:$0xff]  ;;  %v610_v7 = vrot.slane %v105_v5, %v109_v4  ;;  %v612_v8 = vrot.slane %v105_v5, %v113_v6 }
  0x49   :  { %361 = vmatprep.subr.bf16.mxu0 %v360_v27  ;;  %380 = vmatprep.subr.bf16.mxu1 %v360_v27 }
  0x4c   :  { %363 = vmatpush1.bf16.msra.mxu0 %v362_v32  ;;  %388 = vmatpush1.bf16.msra.mxu1 %v362_v32 }
  0x4d   :  { %365 = vmatprep.subr.bf16.mxu0 %v364_v33  ;;  %381 = vmatprep.subr.bf16.mxu1 %v364_v33 }
  0x50   :  { %367 = vmatpush1.bf16.msra.mxu0 %v366_v38  ;;  %389 = vmatpush1.bf16.msra.mxu1 %v366_v38 }
  0x51   :  { %369 = vmatprep.subr.bf16.mxu0 %v368_v39  ;;  %382 = vmatprep.subr.bf16.mxu1 %v368_v39 }
  0x54   :  { %371 = vmatpush1.bf16.msra.mxu0 %v370_v44  ;;  %390 = vmatpush1.bf16.msra.mxu1 %v370_v44 }
  0x55   :  { %373 = vmatprep.subr.bf16.mxu0 %v372_v45  ;;  %383 = vmatprep.subr.bf16.mxu1 %v372_v45 }
  0x58   :  { %375 = vmatpush1.bf16.msra.mxu0 %v374_v48  ;;  %391 = vmatpush1.bf16.msra.mxu1 %v374_v48 }
  0x5b   :  { %182 = vmatmul.mubr.f32.vlgmr.msra.gmra.mrb[0].mxu0 %v57_v49  ;;  %230 = vmatmul.mubr.f32.vlgmr.msra.gmra.mrb[0].mxu1 %v65_v50 }
  0x5c   :  { %187 = vmatprep.mubr.f32.mxu0 %v527_v0  ;;  %235 = vmatprep.mubr.f32.mxu1 %v527_v0 }
  0x5f   :  { %188 = vmatmul.mubr.f32.gmra.mrb[2].mxu0 %v58_v51  ;;  %236 = vmatmul.mubr.f32.gmra.mrb[2].mxu1 %v66_v52 }
  0x60   :  { %193 = vmatprep.mubr.f32.mxu0 %v527_v0  ;;  %241 = vmatprep.mubr.f32.mxu1 %v527_v0 }
  0x63   :  { %194 = vmatmul.mubr.f32.gmra.mrb[4].mxu0 %v59_v53  ;;  %242 = vmatmul.mubr.f32.gmra.mrb[4].mxu1 %v67_v54 }
  0x64   :  { %199 = vmatprep.mubr.f32.mxu0 %v527_v0  ;;  %247 = vmatprep.mubr.f32.mxu1 %v527_v0 }
  0x67   :  { %200 = vmatmul.mubr.f32.gmra.mrb[6].mxu0 %v60_v55  ;;  %248 = vmatmul.mubr.f32.gmra.mrb[6].mxu1 %v68_v56 }
  0x68   :  { %205 = vmatprep.mubr.f32.mxu0 %v527_v0  ;;  %253 = vmatprep.mubr.f32.mxu1 %v527_v0 }
  0x6b   :  { %206 = vmatmul.mubr.f32.gmra.mrb[8].mxu0 %v61_v57  ;;  %254 = vmatmul.mubr.f32.gmra.mrb[8].mxu1 %v69_v58 }
  0x6c   :  { %211 = vmatprep.mubr.f32.mxu0 %v527_v0  ;;  %259 = vmatprep.mubr.f32.mxu1 %v527_v0 }
  0x6f   :  { %212 = vmatmul.mubr.f32.gmra.mrb[10].mxu0 %v62_v59  ;;  %260 = vmatmul.mubr.f32.gmra.mrb[10].mxu1 %v70_v60 }
  0x70   :  { %217 = vmatprep.mubr.f32.mxu0 %v527_v0  ;;  %265 = vmatprep.mubr.f32.mxu1 %v527_v0 }
  0x73   :  { %218 = vmatmul.mubr.f32.gmra.mrb[12].mxu0 %v63_v61  ;;  %266 = vmatmul.mubr.f32.gmra.mrb[12].mxu1 %v71_v62 }
  0x74   :  { %223 = vmatprep.mubr.f32.mxu0 %v527_v0  ;;  %271 = vmatprep.mubr.f32.mxu1 %v527_v0 }
  0x77   :  { %224 = vmatmul.mubr.f32.gmra.mrb[14].mxu0 %v64_v63  ;;  %272 = vmatmul.mubr.f32.gmra.mrb[14].mxu1 %v72_v1 }
 0x12e   :  { %v183_v9 = vpop.f32.mrb[0].mxu0  ;;  %v231_v10 = vpop.f32.mrb[0].mxu1 }
 0x12f   :  { %v184_v11 = vadd.f32 %v183_v9, %v610_v7  ;;  %v232_v12 = vadd.f32 %v231_v10, %v610_v7  ;;  %v185_v0 = vpop.f32.mrb[1].mxu0  ;;  %v233_v13 = vpop.f32.mrb[1].mxu1 }
 0x130   :  { %v186_v14 = vadd.f32 %v185_v0, %v612_v8  ;;  %v234_v15 = vadd.f32 %v233_v13, %v612_v8 }
 0x131   :  { %278 = vst [vmem:[#allocation8] sm:$0xff] %v184_v11  ;;  %286 = vst [vmem:[#allocation8 + $0x40] sm:$0xff] %v232_v12 }
 0x132   :  { %294 = vst [vmem:[#allocation9] sm:$0xff] %v186_v14  ;;  %302 = vst [vmem:[#allocation9 + $0x40] sm:$0xff] %v234_v15  ;;  %v189_v16 = vpop.f32.mrb[2].mxu0  ;;  %v237_v17 = vpop.f32.mrb[2].mxu1 }
 0x133   :  { %v190_v18 = vadd.f32 %v189_v16, %v610_v7  ;;  %v238_v19 = vadd.f32 %v237_v17, %v610_v7  ;;  %v191_v20 = vpop.f32.mrb[3].mxu0  ;;  %v239_v21 = vpop.f32.mrb[3].mxu1 }
 0x134   :  { %v192_v22 = vadd.f32 %v191_v20, %v612_v8  ;;  %v240_v23 = vadd.f32 %v239_v21, %v612_v8 }
 0x135   :  { %279 = vst [vmem:[#allocation8 + $0x8] sm:$0xff] %v190_v18  ;;  %287 = vst [vmem:[#allocation8 + $0x48] sm:$0xff] %v238_v19 }
 0x136   :  { %295 = vst [vmem:[#allocation9 + $0x8] sm:$0xff] %v192_v22  ;;  %303 = vst [vmem:[#allocation9 + $0x48] sm:$0xff] %v240_v23  ;;  %v195_v24 = vpop.f32.mrb[4].mxu0  ;;  %v243_v25 = vpop.f32.mrb[4].mxu1 }
 0x137   :  { %v196_v26 = vadd.f32 %v195_v24, %v610_v7  ;;  %v244_v27 = vadd.f32 %v243_v25, %v610_v7  ;;  %v197_v28 = vpop.f32.mrb[5].mxu0  ;;  %v245_v29 = vpop.f32.mrb[5].mxu1 }
 0x138   :  { %v198_v30 = vadd.f32 %v197_v28, %v612_v8  ;;  %v246_v31 = vadd.f32 %v245_v29, %v612_v8 }
 0x139   :  { %280 = vst [vmem:[#allocation8 + $0x10] sm:$0xff] %v196_v26  ;;  %288 = vst [vmem:[#allocation8 + $0x50] sm:$0xff] %v244_v27 }
 0x13a   :  { %296 = vst [vmem:[#allocation9 + $0x10] sm:$0xff] %v198_v30  ;;  %304 = vst [vmem:[#allocation9 + $0x50] sm:$0xff] %v246_v31  ;;  %v201_v32 = vpop.f32.mrb[6].mxu0  ;;  %v249_v33 = vpop.f32.mrb[6].mxu1 }
 0x13b   :  { %v202_v34 = vadd.f32 %v201_v32, %v610_v7  ;;  %v250_v35 = vadd.f32 %v249_v33, %v610_v7  ;;  %v203_v36 = vpop.f32.mrb[7].mxu0  ;;  %v251_v37 = vpop.f32.mrb[7].mxu1 }
 0x13c   :  { %v204_v38 = vadd.f32 %v203_v36, %v612_v8  ;;  %v252_v39 = vadd.f32 %v251_v37, %v612_v8 }
 0x13d   :  { %281 = vst [vmem:[#allocation8 + $0x18] sm:$0xff] %v202_v34  ;;  %289 = vst [vmem:[#allocation8 + $0x58] sm:$0xff] %v250_v35 }
 0x13e   :  { %297 = vst [vmem:[#allocation9 + $0x18] sm:$0xff] %v204_v38  ;;  %305 = vst [vmem:[#allocation9 + $0x58] sm:$0xff] %v252_v39  ;;  %v207_v40 = vpop.f32.mrb[8].mxu0  ;;  %v255_v41 = vpop.f32.mrb[8].mxu1 }
 0x13f   :  { %v208_v42 = vadd.f32 %v207_v40, %v610_v7  ;;  %v256_v43 = vadd.f32 %v255_v41, %v610_v7  ;;  %v209_v44 = vpop.f32.mrb[9].mxu0  ;;  %v257_v45 = vpop.f32.mrb[9].mxu1 }
 0x140   :  { %v210_v46 = vadd.f32 %v209_v44, %v612_v8  ;;  %v258_v47 = vadd.f32 %v257_v45, %v612_v8 }
 0x141   :  { %282 = vst [vmem:[#allocation8 + $0x20] sm:$0xff] %v208_v42  ;;  %290 = vst [vmem:[#allocation8 + $0x60] sm:$0xff] %v256_v43 }
 0x142   :  { %298 = vst [vmem:[#allocation9 + $0x20] sm:$0xff] %v210_v46  ;;  %306 = vst [vmem:[#allocation9 + $0x60] sm:$0xff] %v258_v47  ;;  %v213_v48 = vpop.f32.mrb[10].mxu0  ;;  %v261_v49 = vpop.f32.mrb[10].mxu1 }
 0x143   :  { %v214_v50 = vadd.f32 %v213_v48, %v610_v7  ;;  %v262_v51 = vadd.f32 %v261_v49, %v610_v7  ;;  %v215_v52 = vpop.f32.mrb[11].mxu0  ;;  %v263_v53 = vpop.f32.mrb[11].mxu1 }
 0x144   :  { %v216_v54 = vadd.f32 %v215_v52, %v612_v8  ;;  %v264_v55 = vadd.f32 %v263_v53, %v612_v8 }
 0x145   :  { %283 = vst [vmem:[#allocation8 + $0x28] sm:$0xff] %v214_v50  ;;  %291 = vst [vmem:[#allocation8 + $0x68] sm:$0xff] %v262_v51 }
 0x146   :  { %299 = vst [vmem:[#allocation9 + $0x28] sm:$0xff] %v216_v54  ;;  %307 = vst [vmem:[#allocation9 + $0x68] sm:$0xff] %v264_v55  ;;  %v219_v56 = vpop.f32.mrb[12].mxu0  ;;  %v267_v57 = vpop.f32.mrb[12].mxu1 }
 0x147   :  { %v220_v58 = vadd.f32 %v219_v56, %v610_v7  ;;  %v268_v59 = vadd.f32 %v267_v57, %v610_v7  ;;  %v221_v60 = vpop.f32.mrb[13].mxu0  ;;  %v269_v61 = vpop.f32.mrb[13].mxu1 }
 0x148   :  { %v222_v62 = vadd.f32 %v221_v60, %v612_v8  ;;  %v270_v63 = vadd.f32 %v269_v61, %v612_v8 }
 0x149   :  { %284 = vst [vmem:[#allocation8 + $0x30] sm:$0xff] %v220_v58  ;;  %292 = vst [vmem:[#allocation8 + $0x70] sm:$0xff] %v268_v59 }
 0x14a   :  { %300 = vst [vmem:[#allocation9 + $0x30] sm:$0xff] %v222_v62  ;;  %308 = vst [vmem:[#allocation9 + $0x70] sm:$0xff] %v270_v63  ;;  %v225_v1 = vpop.f32.mrb[14].mxu0  ;;  %v273_v2 = vpop.f32.mrb[14].mxu1 }
 0x14b   :  { %v226_v3 = vadd.f32 %v225_v1, %v610_v7  ;;  %v274_v4 = vadd.f32 %v273_v2, %v610_v7  ;;  %v227_v5 = vpop.f32.mrb[15].mxu0  ;;  %v275_v6 = vpop.f32.mrb[15].mxu1 }
 0x14c   :  { %v228_v9 = vadd.f32 %v227_v5, %v612_v8  ;;  %v276_v10 = vadd.f32 %v275_v6, %v612_v8 }
 0x14d   :  { %285 = vst [vmem:[#allocation8 + $0x38] sm:$0xff] %v226_v3  ;;  %293 = vst [vmem:[#allocation8 + $0x78] sm:$0xff] %v274_v4 }
 0x14e   :  { %301 = vst [vmem:[#allocation9 + $0x38] sm:$0xff] %v228_v9  ;;  %309 = vst [vmem:[#allocation9 + $0x78] sm:$0xff] %v276_v10 }
 0x14f   :  { %479 = shalt.err (!%p476_p0)
}
 0x150   :  { %s480_s7 = scalar_lea.hbm %s686_s3, 2048 }
 0x151   :  { %p481_p1 = scmp.ne.s32.totalorder %s686_s3, %s480_s7  ;;  %p484_p2 = scmp.lt.u32.totalorder %s480_s7, %s686_s3 }
 0x153   :  { %p486_p3 = pnand %p484_p2, %p481_p1 }
 0x155   :  { %489 = shalt.err (!%p486_p3)
}
 0x156   :  { %321 = dma.vmem_to_hbm [thread:$0]  %s316_s27, 2048, %s686_s3, [#allocation4], %s524_s1, %s524_s1, %s525_s13  }
 0x157   :  { %s490_s15 = scalar_lea.vmem %s646_s29, 2048  ;;  %p495_p5 = scmp.lt.s32.totalorder %s646_s29, %s646_s29 }
 0x158   :  { %p491_p4 = scmp.ne.s32.totalorder %s646_s29, %s490_s15  ;;  %p496_p6 = scmp.lt.s32.totalorder %s490_s15, %s490_s15 }
 0x15a   :  { %p497_p7 = por %p496_p6, %p495_p5 }
 0x15c   :  { %p498_p8 = pnand %p497_p7, %p491_p4 }
 0x15e   :  { %501 = shalt.err (!%p498_p8)
}
 0x15f   :  { %s502_s18 = scalar_lea.hbm %s687_s4, 2048 }
 0x160   :  { %p503_p9 = scmp.ne.s32.totalorder %s687_s4, %s502_s18  ;;  %p506_p10 = scmp.lt.u32.totalorder %s502_s18, %s687_s4 }
 0x162   :  { %p508_p11 = pnand %p506_p10, %p503_p9 }
 0x164   :  { %511 = shalt.err (!%p508_p11)
}
 0x165   :  { %333 = dma.vmem_to_hbm [thread:$0]  %s646_s29, 2048, %s687_s4, [#allocation10], %s524_s1, %s524_s1, %s525_s13  }
 0x166   :  { %516 = dma.done.wait [#allocation4], 2048  }
 0x167   :  { %517 = vsyncadd [#allocation4], 4294965248 }
 0x168   :  { %518 = dma.done.wait [#allocation10], 2048  }
 0x169   :  { %519 = vsyncadd [#allocation10], 4294965248 }
 0x16a   :  { %340 = vsyncpa [#allocation3], 1 }
 0x16b   :  { %341 = vsyncpa [#allocation6], 1 }
 0x16c   :  { %342 = vsyncpa [#allocation4], 1 }
 0x16d   :  { %343 = vsyncpa [#allocation10], 1 }

</bundles_post_ra>
